<compile_context>
chip_gen: v6e
topology: v6e:2x2x1
jax: 0.10.0
libtpu: 0.0.40
codegen_flags: <defaults>
</compile_context>

<pallas_src>
import jax
import jax.numpy as jnp
from jax.experimental import pallas as pl
from jax.experimental.pallas import tpu as pltpu


def _series_decomp_kernel(a_ref, x_ref, res_ref, ma_ref):
    """One grid step: ma = A @ X_block, res = X_block - ma.

    a_ref  : (L, L)  f32 banded moving-average matrix (edge replication baked in)
    x_ref  : (L, Tn) input slab block (lane-dense trailing axis)
    res_ref, ma_ref : (L, Tn) output blocks
    """
    xf = x_ref[...].astype(jnp.float32)
    ma = jnp.dot(a_ref[...], xf, preferred_element_type=jnp.float32)  # MXU, N = Tn
    ma_ref[...] = ma.astype(ma_ref.dtype)
    res_ref[...] = (xf - ma).astype(res_ref.dtype)


def _moving_average_matrix(L: int, kernel_size: int) -> jax.Array:
    """(L, L) matrix A with A @ x == AvgPool1d(edge-replicated x, K, stride=1).

    Built with an O(L*K) scatter-add; duplicate (clipped) indices accumulate,
    which is exactly the edge-replication weight.
    """
    pad = (kernel_size - 1) // 2
    i = jnp.arange(L)
    offs = jnp.arange(-pad, pad + 1)
    pos = jnp.clip(i[:, None] + offs[None, :], 0, L - 1)          # (L, K)
    rows = jnp.broadcast_to(i[:, None], pos.shape)                # (L, K)
    a = jnp.zeros((L, L), jnp.float32).at[rows, pos].add(1.0 / float(kernel_size))
    return a


def _pick_lane_tile(n: int, seq_len: int, itemsize: int) -> int:
    """Lane-axis tile width: multiple of 128, ~1 MiB of HBM traffic per grid
    step (1 read + 2 writes), and >= 2 grid steps whenever n >= 256 so both
    v7x TensorCores get work.  A partial last block is allowed."""
    if n < 256:
        return n  # full-width block; a full-extent trailing dim is always legal
    target_bytes = 1 << 20
    t = target_bytes // (3 * seq_len * itemsize)
    t = max(128, (t // 128) * 128)
    half = max(128, ((n // 2) // 128) * 128)  # guarantee >= 2 grid steps
    return int(min(t, half))


def series_decomposition(x: jax.Array, kernel_size: int):
    """Pallas implementation of SeriesDecomposition.forward.

    Args:
      x: (B, L, C) array (batch, time, channels).
      kernel_size: odd moving-average window size.

    Returns:
      (res, moving_average), both (B, L, C), same dtype as x.
    """
    assert kernel_size % 2 == 1, "kernel_size has to be odd number"
    B, L, C = x.shape
    N = B * C
    itemsize = jnp.dtype(x.dtype).itemsize

    # Lane-dense 2-D slab: (L, B*C).  Layout plumbing done by XLA outside the
    # kernel so the kernel's loads/stores and the matmul N dim are full-lane.
    x2 = jnp.transpose(x, (1, 0, 2)).reshape(L, N)

    a = _moving_average_matrix(L, kernel_size)

    tn = _pick_lane_tile(N, L, itemsize)
    grid = (pl.cdiv(N, tn),)

    out_shape = (
        jax.ShapeDtypeStruct((L, N), x.dtype),  # res
        jax.ShapeDtypeStruct((L, N), x.dtype),  # moving average
    )

    cost = pl.CostEstimate(
        flops=2 * L * L * N + L * N,
        transcendentals=0,
        bytes_accessed=3 * L * N * itemsize + L * L * 4,
    )

    # VMEM: A (double-buffered, conservatively) + double-buffered x block +
    # two double-buffered output blocks.  Clamp to 48 MiB (safe on v7x's
    # 64 MiB/TC while generous for v5e/v6e's 128 MiB).
    block_bytes = L * tn * itemsize
    vmem_est = 2 * (L * L * 4) + 2 * block_bytes + 4 * block_bytes
    vmem_limit = int(min(max(2 * vmem_est + (4 << 20), 16 << 20), 48 << 20))

    res2, ma2 = pl.pallas_call(
        _series_decomp_kernel,
        out_shape=out_shape,
        grid_spec=pltpu.PrefetchScalarGridSpec(
            num_scalar_prefetch=0,
            grid=grid,
            in_specs=[
                # Constant block index -> A is fetched into VMEM once and reused.
                pl.BlockSpec((L, L), lambda i: (0, 0)),
                pl.BlockSpec((L, tn), lambda i: (0, i)),
            ],
            out_specs=[
                pl.BlockSpec((L, tn), lambda i: (0, i)),
                pl.BlockSpec((L, tn), lambda i: (0, i)),
            ],
        ),
        compiler_params=pltpu.CompilerParams(
            dimension_semantics=("parallel",),
            vmem_limit_bytes=vmem_limit,
        ),
        cost_estimate=cost,
    )(a, x2)

    res = jnp.transpose(res2.reshape(L, B, C), (1, 0, 2))
    ma = jnp.transpose(ma2.reshape(L, B, C), (1, 0, 2))
    return res, ma


def _reference(x, kernel_size):
    """Pure-JAX reference mirroring the PyTorch module exactly."""
    pad = (kernel_size - 1) // 2
    front = jnp.repeat(x[:, 0:1, :], pad, axis=1)
    end = jnp.repeat(x[:, -1:, :], pad, axis=1)
    xp = jnp.concatenate([front, x, end], axis=1)
    L = x.shape[1]
    windows = jnp.stack([xp[:, i:i + L, :] for i in range(kernel_size)], axis=0)
    ma = jnp.mean(windows, axis=0)
    return x - ma, ma


if __name__ == "__main__":
    key = jax.random.PRNGKey(0)

    configs = [
        # (B, L, C, kernel_size)
        (2, 16, 8, 5),    # tiny sanity config (N=16, single block)
        (16, 24, 7, 7),   # DLinear-ish odd channel count (N=112, single block)
        (3, 40, 96, 9),   # N=288 -> lane tile 128, 3 grid steps, partial last block
        (8, 32, 64, 25),  # DLinear default K=25, N=512 -> 2 full lane tiles
    ]
    for (B, L, C, K) in configs:
        key, sub = jax.random.split(key)
        x = jax.random.normal(sub, (B, L, C), dtype=jnp.float32)

        res, ma = series_decomposition(x, K)
        res = jax.block_until_ready(res)
        ma = jax.block_until_ready(ma)

        res_ref, ma_ref = _reference(x, K)
        assert jnp.allclose(ma, ma_ref, atol=1e-5, rtol=1e-5), (B, L, C, K)
        assert jnp.allclose(res, res_ref, atol=1e-5, rtol=1e-5), (B, L, C, K)
        assert jnp.allclose(res + ma, x, atol=1e-5, rtol=1e-5), (B, L, C, K)

    print("KERNEL_OK")
</pallas_src>

<mosaic_0001>
module attributes {stable_mosaic.version = 11 : i64} {
  func.func @_series_decomp_kernel(%arg0: i32, %arg1: memref<16x16xf32, #tpu.memory_space<vmem>>, %arg2: memref<16x16xf32, #tpu.memory_space<vmem>>, %arg3: memref<16x16xf32, #tpu.memory_space<vmem>>, %arg4: memref<16x16xf32, #tpu.memory_space<vmem>>) attributes {dimension_semantics = [#tpu.dimension_semantics<parallel>], iteration_bounds = array<i64: 1>, scalar_prefetch = 0 : i64, scratch_operands = 0 : i64, tpu.core_type = #tpu.core_type<tc>, window_params = [{pipeline_mode = #tpu.pipeline_mode<synchronous>, transform_indices = @transform_0, window_bounds = array<i64: 16, 16>}, {transform_indices = @transform_1, window_bounds = array<i64: 16, 16>}, {transform_indices = @transform_2, window_bounds = array<i64: 16, 16>}, {transform_indices = @transform_3, window_bounds = array<i64: 16, 16>}]} {
    %c0 = arith.constant 0 : index
    %c0_0 = arith.constant 0 : index
    %0 = vector.load %arg2[%c0, %c0_0] : memref<16x16xf32, #tpu.memory_space<vmem>>, vector<16x16xf32>
    %c0_1 = arith.constant 0 : index
    %c0_2 = arith.constant 0 : index
    %1 = vector.load %arg1[%c0_1, %c0_2] : memref<16x16xf32, #tpu.memory_space<vmem>>, vector<16x16xf32>
    %cst = arith.constant dense<0.000000e+00> : vector<16x16xf32>
    %2 = tpu.matmul %1, %0, %cst {dimension_numbers = #tpu.dot_dimension_numbers<[1], [0], [0], [1], [0, 0, 1, 1], [], []>} : vector<16x16xf32>, vector<16x16xf32>, vector<16x16xf32> -> vector<16x16xf32>
    %c0_3 = arith.constant 0 : index
    %c0_4 = arith.constant 0 : index
    %3 = vector.load %arg4[%c0_3, %c0_4] : memref<16x16xf32, #tpu.memory_space<vmem>>, vector<16x16xf32>
    tpu.vector_store %arg4[%c0_3, %c0_4], %2 {strides = array<i32>} : memref<16x16xf32, #tpu.memory_space<vmem>>, vector<16x16xf32>,
    %4 = arith.subf %0, %2 : vector<16x16xf32>
    %c0_5 = arith.constant 0 : index
    %c0_6 = arith.constant 0 : index
    %5 = vector.load %arg3[%c0_5, %c0_6] : memref<16x16xf32, #tpu.memory_space<vmem>>, vector<16x16xf32>
    tpu.vector_store %arg3[%c0_5, %c0_6], %4 {strides = array<i32>} : memref<16x16xf32, #tpu.memory_space<vmem>>, vector<16x16xf32>,
    return
  }
  func.func @transform_0(%arg0: i32) -> (i32, i32) {
    %c0_i32 = arith.constant 0 : i32
    %c0_i32_0 = arith.constant 0 : i32
    %c0_i32_1 = arith.constant 0 : i32
    return %c0_i32, %c0_i32_0 : i32, i32
  }
  func.func @transform_1(%arg0: i32) -> (i32, i32) {
    %c0_i32 = arith.constant 0 : i32
    %c0_i32_0 = arith.constant 0 : i32
    return %c0_i32, %arg0 : i32, i32
  }
  func.func @transform_2(%arg0: i32) -> (i32, i32) {
    %c0_i32 = arith.constant 0 : i32
    %c0_i32_0 = arith.constant 0 : i32
    return %c0_i32, %arg0 : i32, i32
  }
  func.func @transform_3(%arg0: i32) -> (i32, i32) {
    %c0_i32 = arith.constant 0 : i32
    %c0_i32_0 = arith.constant 0 : i32
    return %c0_i32, %arg0 : i32, i32
  }
}

</mosaic_0001>

<bundles_post_ra>
// kernel: tpu_custom_call.1
= control target key start
LH: loop header
LB: loop body
LE: loop exit
PB: predicated region body
PF: predicated region fallthrough
CT: control target
= control target key end

     0   :  { %9 = vsyncpa [#allocation3], 0  ;;  %s332_s0 = inlined_call_operand.hbm [shape: f32[16,16], index: 0, kind: input, shape index: {}]   ;;  %s333_s1 = inlined_call_operand.hbm [shape: f32[16,16], index: 1, kind: input, shape index: {}]   ;;  %s334_s2 = inlined_call_operand.hbm [shape: f32[16,16], index: 2, kind: output, shape index: {0}]   ;;  %s335_s3 = inlined_call_operand.hbm [shape: f32[16,16], index: 3, kind: output, shape index: {1}]  }
   0x1   :  { %10 = vsyncpa [#allocation6], 0 }
   0x2   :  { %11 = vsyncpa [#allocation4], 0 }
   0x3   :  { %12 = vsyncpa [#allocation9], 0  ;;  %s276_s12 = smov [#allocation2]  }
   0x4   :  { %s18_s13 = sshll.u32 %s276_s12, 4  ;;  %s19_s13 = int_to_ptr.vmem [resolvable:$true] %s18_s13 }
   0x5   :  { %s196_s14 = scalar_lea.vmem %s19_s13, 256  ;;  %p201_p1 = scmp.lt.s32.totalorder %s19_s13, %s19_s13 }
   0x6   :  { %p197_p0 = scmp.ne.s32.totalorder %s19_s13, %s196_s14  ;;  %p202_p2 = scmp.lt.s32.totalorder %s196_s14, %s196_s14 }
   0x8   :  { %p203_p3 = por %p202_p2, %p201_p1 }
   0xa   :  { %p204_p4 = pnand %p203_p3, %p197_p0 }
   0xc   :  { %207 = shalt.err (!%p204_p4)
}
   0xd   :  { %s277_s15 = smov 128   ;;  %s278_s16 = smov 8  }
   0xe   :  { %24 = dma.hbm_to_vmem [thread:$0]  %s332_s0, 256, %s19_s13, [#allocation3], %s277_s15, %s277_s15, %s278_s16  }
   0xf   :  { %s279_s19 = smov [#allocation5]  }
  0x10   :  { %s30_s20 = sshll.u32 %s279_s19, 4  ;;  %s31_s20 = int_to_ptr.vmem [resolvable:$true] %s30_s20 }
  0x11   :  { %s216_s21 = scalar_lea.vmem %s31_s20, 256  ;;  %p221_p6 = scmp.lt.s32.totalorder %s31_s20, %s31_s20 }
  0x12   :  { %p217_p5 = scmp.ne.s32.totalorder %s31_s20, %s216_s21  ;;  %p222_p7 = scmp.lt.s32.totalorder %s216_s21, %s216_s21 }
  0x14   :  { %p223_p8 = por %p222_p7, %p221_p6 }
  0x16   :  { %p224_p9 = pnand %p223_p8, %p217_p5 }
  0x18   :  { %227 = shalt.err (!%p224_p9)
}
  0x19   :  { %36 = dma.hbm_to_vmem [thread:$0]  %s333_s1, 256, %s31_s20, [#allocation6], %s277_s15, %s277_s15, %s278_s16  }
  0x1a   :  { %268 = dma.done.wait [#allocation3], 256  }
  0x1b   :  { %269 = vsyncadd [#allocation3], 4294967040 }
  0x1c   :  { %270 = dma.done.wait [#allocation6], 256  }
  0x1d   :  { %271 = vsyncadd [#allocation6], 4294967040  ;;  %vm47_vm0 = vcmask 130048   ;;  %v44_v0 = vld [vmem:[#allocation5 + $0x8] sm:$0xff]  ;;  %v43_v1 = vld [vmem:[#allocation5] sm:$0xff]  ;;  %s280_s0 = smov [#allocation8]  }
  0x1e   :  { %v45_v2 = vld [vmem:[#allocation2] sm:$0xff]  ;;  %175 = vmatprep.subr.mxu0 %v44_v0  ;;  %v46_v3 = vld [vmem:[#allocation2 + $0x8] sm:$0xff]  ;;  %s152_s24 = sshll.u32 %s280_s0, 4  ;;  %s281_s1 = smov [#allocation7]   ;;  %s153_s24 = int_to_ptr.vmem [resolvable:$true] %s152_s24 }
  0x1f   :  { %179 = vmatprep.mubr.msk.f32.mxu0 %vm47_vm0, %v45_v2  ;;  %176 = vmatpush3.msra.mxu0 %v44_v0  ;;  %s140_s25 = sshll.u32 %s281_s1, 4  ;;  %s228_s26 = scalar_lea.vmem %s153_s24, 256  ;;  %s141_s25 = int_to_ptr.vmem [resolvable:$true] %s140_s25 }
  0x20   :  { %177 = vmatprep.subr.mxu0 %v43_v1  ;;  %p229_p10 = scmp.ne.s32.totalorder %s153_s24, %s228_s26  ;;  %p233_p11 = scmp.lt.s32.totalorder %s153_s24, %s153_s24 }
  0x21   :  { %178 = vmatpush3.msra.mxu0 %v43_v1  ;;  %p234_p12 = scmp.lt.s32.totalorder %s228_s26, %s228_s26 }
  0x22   :  { %180 = vmatmul.mubr.msk.f32.vlgmr.msra.gmra.mxu0 %vm47_vm0, %v46_v3 }
  0x23   :  { %p235_p13 = por %p234_p12, %p233_p11 }
  0x25   :  { %p236_p0 = pnand %p235_p13, %p229_p10 }
  0xe2   :  { %v181_v4 = vpop.f32.mrf.mxu0 }
  0xe3   :  { %130 = vst.msk [vmem:[#allocation8 + $0x8] sm:$0xff] %vm47_vm0, %v181_v4  ;;  %v132_v5 = vsub.f32 %v44_v0, %v181_v4 }
  0xe4   :  { %v120_v6 = vpop.f32.mrf.mxu0 }
  0xe5   :  { %134 = vst.msk [vmem:[#allocation7 + $0x8] sm:$0xff] %vm47_vm0, %v132_v5  ;;  %129 = vst.msk [vmem:[#allocation8] sm:$0xff] %vm47_vm0, %v120_v6  ;;  %v131_v7 = vsub.f32 %v43_v1, %v120_v6 }
  0xe6   :  { %239 = shalt.err (!%p236_p0)
}
  0xe7   :  { %158 = dma.vmem_to_hbm [thread:$0]  %s153_s24, 256, %s335_s3, [#allocation9], %s277_s15, %s277_s15, %s278_s16   ;;  %133 = vst.msk [vmem:[#allocation7] sm:$0xff] %vm47_vm0, %v131_v7 }
  0xe8   :  { %s248_s29 = scalar_lea.vmem %s141_s25, 256  ;;  %p253_p2 = scmp.lt.s32.totalorder %s141_s25, %s141_s25 }
  0xe9   :  { %p249_p1 = scmp.ne.s32.totalorder %s141_s25, %s248_s29  ;;  %p254_p3 = scmp.lt.s32.totalorder %s248_s29, %s248_s29 }
  0xeb   :  { %p255_p4 = por %p254_p3, %p253_p2 }
  0xed   :  { %p256_p5 = pnand %p255_p4, %p249_p1 }
  0xef   :  { %259 = shalt.err (!%p256_p5)
}
  0xf0   :  { %146 = dma.vmem_to_hbm [thread:$0]  %s141_s25, 256, %s334_s2, [#allocation4], %s277_s15, %s277_s15, %s278_s16  }
  0xf1   :  { %272 = dma.done.wait [#allocation4], 256  }
  0xf2   :  { %273 = vsyncadd [#allocation4], 4294967040 }
  0xf3   :  { %274 = dma.done.wait [#allocation9], 256  }
  0xf4   :  { %275 = vsyncadd [#allocation9], 4294967040 }
  0xf5   :  { %165 = vsyncpa [#allocation3], 1 }
  0xf6   :  { %166 = vsyncpa [#allocation6], 1 }
  0xf7   :  { %167 = vsyncpa [#allocation4], 1 }
  0xf8   :  { %168 = vsyncpa [#allocation9], 1 }

</bundles_post_ra>
